<compile_context>
chip_gen: v6e
topology: v6e:2x2x1
jax: 0.10.0
libtpu: 0.0.40
codegen_flags: <defaults>
</compile_context>

<pallas_src>
import functools

import jax
import jax.numpy as jnp
from jax.experimental import pallas as pl
from jax.experimental.pallas import tpu as pltpu


# ----------------------------- Pallas kernel ------------------------------- #
def _conv1x1_kernel(*refs, n_in, n_w, has_bias, relu):
    """out[0] = relu( sum_i w_i @ x_i + bias ).

    refs layout: x_refs[0..n_in-1], w_refs[0..n_w-1], (bias_ref), out_ref
      x_ref : (1, C, TL)   bf16, spatial on the lane axis
      w_ref : (Cout, C)    bf16
      bias  : (Cout, 1)    f32
      out   : (1, Cout, TL) f32  — lane-dense store
    """
    x_refs = refs[:n_in]
    w_refs = refs[n_in:n_in + n_w]
    b_ref = refs[n_in + n_w] if has_bias else None
    o_ref = refs[-1]

    acc = None
    for i, x_ref in enumerate(x_refs):
        w = w_refs[i if n_w > 1 else 0][...]
        part = jnp.dot(w, x_ref[0], preferred_element_type=jnp.float32)
        acc = part if acc is None else acc + part
    if has_bias:
        acc = acc + b_ref[...]
    if relu:
        acc = jnp.maximum(acc, 0.0)
    o_ref[0] = acc.astype(o_ref.dtype)


def _pick_spatial_tile(L, max_elems=8 * 1024):
    """Whole spatial extent in one block when small; otherwise the largest
    128-multiple divisor (keeps stores lane-dense with no ragged tail)."""
    if L <= max_elems:
        return L
    t = (max_elems // 128) * 128
    while t >= 128:
        if L % t == 0:
            return t
        t -= 128
    return L


def conv1x1_pallas(x_list, w_list, bias=None, relu=False, out_dtype=jnp.float32):
    """x_list: list of (B, C, L) f32; w_list: 1 (shared) or len(x_list) weights
    of shape (Cout, C).  Returns (B, Cout, L) = sum_i w_i @ x_i (+bias)(+relu)."""
    B, C, L = x_list[0].shape
    Cout = w_list[0].shape[0]
    n_in, n_w = len(x_list), len(w_list)
    has_bias = bias is not None
    TL = _pick_spatial_tile(L)

    in_specs = []
    args = []
    for x in x_list:
        in_specs.append(pl.BlockSpec((1, C, TL), lambda b, s: (b, 0, s)))
        args.append(x.astype(jnp.bfloat16))
    for wgt in w_list:
        in_specs.append(pl.BlockSpec(wgt.shape, lambda b, s: (0, 0)))
        args.append(wgt.astype(jnp.bfloat16))
    if has_bias:
        in_specs.append(pl.BlockSpec((Cout, 1), lambda b, s: (0, 0)))
        args.append(bias.reshape(Cout, 1).astype(jnp.float32))

    return pl.pallas_call(
        functools.partial(_conv1x1_kernel, n_in=n_in, n_w=n_w,
                          has_bias=has_bias, relu=relu),
        out_shape=jax.ShapeDtypeStruct((B, Cout, L), out_dtype),
        grid_spec=pltpu.PrefetchScalarGridSpec(
            num_scalar_prefetch=0,
            grid=(B, L // TL),
            in_specs=in_specs,
            out_specs=pl.BlockSpec((1, Cout, TL), lambda b, s: (b, 0, s)),
        ),
        compiler_params=pltpu.CompilerParams(
            dimension_semantics=("parallel", "parallel")),
    )(*args)


# ----------------------- pure-JAX reference (same math) --------------------- #
def conv1x1_ref(x_list, w_list, bias=None, relu=False):
    acc = None
    for i, x in enumerate(x_list):
        wb = w_list[i if len(w_list) > 1 else 0].astype(jnp.bfloat16)
        part = jnp.einsum("ok,bkl->bol", wb, x.astype(jnp.bfloat16),
                          preferred_element_type=jnp.float32)
        acc = part if acc is None else acc + part
    if bias is not None:
        acc = acc + bias.astype(jnp.float32).reshape(1, -1, 1)
    if relu:
        acc = jnp.maximum(acc, 0.0)
    return acc


# ------------------------------ module glue --------------------------------- #
def conv1x1(x_list, w_list, bias=None, relu=False, use_pallas=True):
    """Fused 1x1 conv on NCHW inputs: sum_i w_i @ x_i (+bias)(+relu)."""
    B, C, H, W = x_list[0].shape
    flat = [x.reshape(B, x.shape[1], H * W) for x in x_list]
    if use_pallas:
        y = conv1x1_pallas(flat, w_list, bias, relu)
    else:
        y = conv1x1_ref(flat, w_list, bias, relu)
    return y.reshape(B, -1, H, W)


def fourier_unit(x, p, use_pallas=True):
    """FourierUnit.forward: rfft2 -> conv1x1+BN+ReLU -> irfft2.
    The torch.cat([real, imag], dim=1) is fused into the conv by splitting the
    weight along its input channels (two dots, no HBM concat)."""
    # TODO(synk): rfft2/irfft2 have no Pallas equivalent; kept in plain JAX.
    B, C, H, W = x.shape
    ff = jnp.fft.rfft2(x, s=(H, W), axes=(2, 3), norm="ortho")    # (B,C,H,Wf) complex
    y = conv1x1([jnp.real(ff), jnp.imag(ff)],
                [p["w"][:, :C], p["w"][:, C:]],
                bias=p["bias"], relu=True, use_pallas=use_pallas)  # (B,2C,H,Wf)
    yr, yi = jnp.split(y, 2, axis=1)
    return jnp.fft.irfft2(jax.lax.complex(yr, yi), s=(H, W), axes=(2, 3),
                          norm="ortho")                            # (B,C,H,W)


def avg_pool_2x2(x):
    B, C, H, W = x.shape
    return x.reshape(B, C, H // 2, 2, W // 2, 2).mean(axis=(3, 5))


def spectral_transform(x, params, stride=1, enable_lfu=True, use_pallas=True):
    if stride == 2:
        x = avg_pool_2x2(x)
    # conv1: 1x1 conv + (folded) BN + ReLU
    x = conv1x1([x], [params["conv1"]["w"]], params["conv1"]["bias"],
                relu=True, use_pallas=use_pallas)
    output = fourier_unit(x, params["fu"], use_pallas)
    if enable_lfu:
        n, c, h, w = x.shape
        split_no = 2
        xq = x[:, : c // 4]
        xs = jnp.concatenate(jnp.split(xq, split_no, axis=2), axis=1)
        xs = jnp.concatenate(jnp.split(xs, split_no, axis=3), axis=1)
        xs = fourier_unit(xs, params["lfu"], use_pallas)
        xs = jnp.tile(xs, (1, 1, split_no, split_no))
        terms = [x, output, xs]
    else:
        terms = [x, output]
    # conv2 (no BN/ReLU); the x + fu + lfu sum is fused into the kernel as
    # sum_i w @ term_i (no HBM temp for the elementwise sum).
    return conv1x1(terms, [params["conv2_w"]], bias=None, relu=False,
                   use_pallas=use_pallas)


# ------------------------------ parameter init ------------------------------ #
def make_params(key, in_channels, out_channels):
    """Random conv weights + BN statistics; BN scale is folded into the conv
    weights here (host-side) so the kernel only needs a per-channel bias."""
    c2 = out_channels // 2
    ks = jax.random.split(key, 8)

    def bn_stats(k, ch):
        k1, k2, k3, k4 = jax.random.split(k, 4)
        gamma = 1.0 + 0.1 * jax.random.normal(k1, (ch,), jnp.float32)
        beta = 0.1 * jax.random.normal(k2, (ch,), jnp.float32)
        mean = 0.1 * jax.random.normal(k3, (ch,), jnp.float32)
        var = 1.0 + 0.05 * jnp.abs(jax.random.normal(k4, (ch,), jnp.float32))
        return gamma, beta, mean, var

    def fold(w, stats, eps=1e-5):
        gamma, beta, mean, var = stats
        scale = gamma / jnp.sqrt(var + eps)
        return w * scale[:, None], beta - mean * scale

    def fu_params(kw, kb, ch):  # FourierUnit(ch, ch): conv 2ch -> 2ch
        w = 0.1 * jax.random.normal(kw, (2 * ch, 2 * ch), jnp.float32)
        wf, bf = fold(w, bn_stats(kb, 2 * ch))
        return {"w": wf, "bias": bf}

    conv1_w = 0.1 * jax.random.normal(ks[0], (c2, in_channels), jnp.float32)
    w1, b1 = fold(conv1_w, bn_stats(ks[1], c2))
    return {
        "conv1": {"w": w1, "bias": b1},
        "fu": fu_params(ks[2], ks[3], c2),
        "lfu": fu_params(ks[4], ks[5], c2),
        "conv2_w": 0.1 * jax.random.normal(ks[6], (out_channels, c2), jnp.float32),
    }


# ---------------------------------- main ------------------------------------ #
if __name__ == "__main__":
    key = jax.random.PRNGKey(0)
    k_in, k_par = jax.random.split(key)

    B, Cin, H, W = 2, 4, 16, 16
    Cout = 8
    x = jax.random.normal(k_in, (B, Cin, H, W), jnp.float32)
    params = make_params(k_par, Cin, Cout)

    fwd = jax.jit(functools.partial(spectral_transform, stride=1,
                                    enable_lfu=True, use_pallas=True))
    ref_fwd = jax.jit(functools.partial(spectral_transform, stride=1,
                                        enable_lfu=True, use_pallas=False))

    out = jax.block_until_ready(fwd(x, params))
    ref = jax.block_until_ready(ref_fwd(x, params))

    assert out.shape == (B, Cout, H, W), out.shape
    assert bool(jnp.all(jnp.isfinite(out)))
    err = float(jnp.max(jnp.abs(out - ref)))
    assert err < 1e-2, f"max abs diff vs pure-JAX reference: {err}"
    print("KERNEL_OK")
</pallas_src>

<mosaic_0001>
module attributes {stable_mosaic.version = 11 : i64} {
  func.func @_conv1x1_kernel(%arg0: i32, %arg1: i32, %arg2: memref<1x4x256xbf16, #tpu.memory_space<vmem>>, %arg3: memref<4x4xbf16, #tpu.memory_space<vmem>>, %arg4: memref<4x1xf32, #tpu.memory_space<vmem>>, %arg5: memref<1x4x256xf32, #tpu.memory_space<vmem>>) attributes {dimension_semantics = [#tpu.dimension_semantics<parallel>, #tpu.dimension_semantics<parallel>], iteration_bounds = array<i64: 2, 1>, scalar_prefetch = 0 : i64, scratch_operands = 0 : i64, tpu.core_type = #tpu.core_type<tc>, window_params = [{transform_indices = @transform_0, window_bounds = array<i64: 1, 4, 256>}, {pipeline_mode = #tpu.pipeline_mode<synchronous>, transform_indices = @transform_1, window_bounds = array<i64: 4, 4>}, {pipeline_mode = #tpu.pipeline_mode<synchronous>, transform_indices = @transform_2, window_bounds = array<i64: 4, 1>}, {transform_indices = @transform_3, window_bounds = array<i64: 1, 4, 256>}]} {
    %c0 = arith.constant 0 : index
    %c0_0 = arith.constant 0 : index
    %0 = vector.load %arg3[%c0, %c0_0] : memref<4x4xbf16, #tpu.memory_space<vmem>>, vector<4x4xbf16>
    %c0_1 = arith.constant 0 : index
    %c0_2 = arith.constant 0 : index
    %c0_3 = arith.constant 0 : index
    %1 = vector.load %arg2[%c0_1, %c0_2, %c0_3] : memref<1x4x256xbf16, #tpu.memory_space<vmem>>, vector<1x4x256xbf16>
    %2 = vector.shape_cast %1 : vector<1x4x256xbf16> to vector<4x256xbf16>
    %cst = arith.constant dense<0.000000e+00> : vector<4x256xf32>
    %3 = tpu.matmul %0, %2, %cst {dimension_numbers = #tpu.dot_dimension_numbers<[1], [0], [0], [1], [0, 0, 1, 1], [], []>} : vector<4x4xbf16>, vector<4x256xbf16>, vector<4x256xf32> -> vector<4x256xf32>
    %c0_4 = arith.constant 0 : index
    %c0_5 = arith.constant 0 : index
    %4 = vector.load %arg4[%c0_4, %c0_5] : memref<4x1xf32, #tpu.memory_space<vmem>>, vector<4x1xf32>
    %5 = vector.broadcast %4 : vector<4x1xf32> to vector<4x256xf32>
    %6 = arith.addf %3, %5 : vector<4x256xf32>
    %cst_6 = arith.constant 0.000000e+00 : f32
    %7 = vector.broadcast %cst_6 : f32 to vector<4x256xf32>
    %8 = arith.maximumf %6, %7 : vector<4x256xf32>
    %c0_7 = arith.constant 0 : index
    %c0_8 = arith.constant 0 : index
    %c0_9 = arith.constant 0 : index
    %9 = vector.load %arg5[%c0_7, %c0_8, %c0_9] : memref<1x4x256xf32, #tpu.memory_space<vmem>>, vector<1x4x256xf32>
    %10 = vector.shape_cast %9 : vector<1x4x256xf32> to vector<4x256xf32>
    %11 = vector.shape_cast %8 : vector<4x256xf32> to vector<1x4x256xf32>
    tpu.vector_store %arg5[%c0_7, %c0_8, %c0_9], %11 {strides = array<i32>} : memref<1x4x256xf32, #tpu.memory_space<vmem>>, vector<1x4x256xf32>,
    return
  }
  func.func @transform_0(%arg0: i32, %arg1: i32) -> (i32, i32, i32) {
    %c0_i32 = arith.constant 0 : i32
    %c0_i32_0 = arith.constant 0 : i32
    return %arg0, %c0_i32, %arg1 : i32, i32, i32
  }
  func.func @transform_1(%arg0: i32, %arg1: i32) -> (i32, i32) {
    %c0_i32 = arith.constant 0 : i32
    %c0_i32_0 = arith.constant 0 : i32
    %c0_i32_1 = arith.constant 0 : i32
    return %c0_i32, %c0_i32_0 : i32, i32
  }
  func.func @transform_2(%arg0: i32, %arg1: i32) -> (i32, i32) {
    %c0_i32 = arith.constant 0 : i32
    %c0_i32_0 = arith.constant 0 : i32
    %c0_i32_1 = arith.constant 0 : i32
    return %c0_i32, %c0_i32_0 : i32, i32
  }
  func.func @transform_3(%arg0: i32, %arg1: i32) -> (i32, i32, i32) {
    %c0_i32 = arith.constant 0 : i32
    %c0_i32_0 = arith.constant 0 : i32
    return %arg0, %c0_i32, %arg1 : i32, i32, i32
  }
}

module attributes {stable_mosaic.version = 11 : i64} {
  func.func @_conv1x1_kernel(%arg0: i32, %arg1: i32, %arg2: memref<1x4x40xbf16, #tpu.memory_space<vmem>>, %arg3: memref<1x4x40xbf16, #tpu.memory_space<vmem>>, %arg4: memref<8x4xbf16, #tpu.memory_space<vmem>>, %arg5: memref<8x4xbf16, #tpu.memory_space<vmem>>, %arg6: memref<8x1xf32, #tpu.memory_space<vmem>>, %arg7: memref<1x8x40xf32, #tpu.memory_space<vmem>>) attributes {dimension_semantics = [#tpu.dimension_semantics<parallel>, #tpu.dimension_semantics<parallel>], iteration_bounds = array<i64: 2, 1>, scalar_prefetch = 0 : i64, scratch_operands = 0 : i64, tpu.core_type = #tpu.core_type<tc>, window_params = [{transform_indices = @transform_0, window_bounds = array<i64: 1, 4, 40>}, {transform_indices = @transform_1, window_bounds = array<i64: 1, 4, 40>}, {pipeline_mode = #tpu.pipeline_mode<synchronous>, transform_indices = @transform_2, window_bounds = array<i64: 8, 4>}, {pipeline_mode = #tpu.pipeline_mode<synchronous>, transform_indices = @transform_3, window_bounds = array<i64: 8, 4>}, {pipeline_mode = #tpu.pipeline_mode<synchronous>, transform_indices = @transform_4, window_bounds = array<i64: 8, 1>}, {transform_indices = @transform_5, window_bounds = array<i64: 1, 8, 40>}]} {
    %c0 = arith.constant 0 : index
    %c0_0 = arith.constant 0 : index
    %0 = vector.load %arg4[%c0, %c0_0] : memref<8x4xbf16, #tpu.memory_space<vmem>>, vector<8x4xbf16>
    %c0_1 = arith.constant 0 : index
    %c0_2 = arith.constant 0 : index
    %c0_3 = arith.constant 0 : index
    %1 = vector.load %arg2[%c0_1, %c0_2, %c0_3] : memref<1x4x40xbf16, #tpu.memory_space<vmem>>, vector<1x4x40xbf16>
    %2 = vector.shape_cast %1 : vector<1x4x40xbf16> to vector<4x40xbf16>
    %cst = arith.constant dense<0.000000e+00> : vector<8x40xf32>
    %3 = tpu.matmul %0, %2, %cst {dimension_numbers = #tpu.dot_dimension_numbers<[1], [0], [0], [1], [0, 0, 1, 1], [], []>} : vector<8x4xbf16>, vector<4x40xbf16>, vector<8x40xf32> -> vector<8x40xf32>
    %c0_4 = arith.constant 0 : index
    %c0_5 = arith.constant 0 : index
    %4 = vector.load %arg5[%c0_4, %c0_5] : memref<8x4xbf16, #tpu.memory_space<vmem>>, vector<8x4xbf16>
    %c0_6 = arith.constant 0 : index
    %c0_7 = arith.constant 0 : index
    %c0_8 = arith.constant 0 : index
    %5 = vector.load %arg3[%c0_6, %c0_7, %c0_8] : memref<1x4x40xbf16, #tpu.memory_space<vmem>>, vector<1x4x40xbf16>
    %6 = vector.shape_cast %5 : vector<1x4x40xbf16> to vector<4x40xbf16>
    %cst_9 = arith.constant dense<0.000000e+00> : vector<8x40xf32>
    %7 = tpu.matmul %4, %6, %cst_9 {dimension_numbers = #tpu.dot_dimension_numbers<[1], [0], [0], [1], [0, 0, 1, 1], [], []>} : vector<8x4xbf16>, vector<4x40xbf16>, vector<8x40xf32> -> vector<8x40xf32>
    %8 = arith.addf %3, %7 : vector<8x40xf32>
    %c0_10 = arith.constant 0 : index
    %c0_11 = arith.constant 0 : index
    %9 = vector.load %arg6[%c0_10, %c0_11] : memref<8x1xf32, #tpu.memory_space<vmem>>, vector<8x1xf32>
    %10 = vector.broadcast %9 : vector<8x1xf32> to vector<8x40xf32>
    %11 = arith.addf %8, %10 : vector<8x40xf32>
    %cst_12 = arith.constant 0.000000e+00 : f32
    %12 = vector.broadcast %cst_12 : f32 to vector<8x40xf32>
    %13 = arith.maximumf %11, %12 : vector<8x40xf32>
    %c0_13 = arith.constant 0 : index
    %c0_14 = arith.constant 0 : index
    %c0_15 = arith.constant 0 : index
    %14 = vector.load %arg7[%c0_13, %c0_14, %c0_15] : memref<1x8x40xf32, #tpu.memory_space<vmem>>, vector<1x8x40xf32>
    %15 = vector.shape_cast %14 : vector<1x8x40xf32> to vector<8x40xf32>
    %16 = vector.shape_cast %13 : vector<8x40xf32> to vector<1x8x40xf32>
    tpu.vector_store %arg7[%c0_13, %c0_14, %c0_15], %16 {strides = array<i32>} : memref<1x8x40xf32, #tpu.memory_space<vmem>>, vector<1x8x40xf32>,
    return
  }
  func.func @transform_0(%arg0: i32, %arg1: i32) -> (i32, i32, i32) {
    %c0_i32 = arith.constant 0 : i32
    %c0_i32_0 = arith.constant 0 : i32
    return %arg0, %c0_i32, %arg1 : i32, i32, i32
  }
  func.func @transform_1(%arg0: i32, %arg1: i32) -> (i32, i32, i32) {
    %c0_i32 = arith.constant 0 : i32
    %c0_i32_0 = arith.constant 0 : i32
    return %arg0, %c0_i32, %arg1 : i32, i32, i32
  }
  func.func @transform_2(%arg0: i32, %arg1: i32) -> (i32, i32) {
    %c0_i32 = arith.constant 0 : i32
    %c0_i32_0 = arith.constant 0 : i32
    %c0_i32_1 = arith.constant 0 : i32
    return %c0_i32, %c0_i32_0 : i32, i32
  }
  func.func @transform_3(%arg0: i32, %arg1: i32) -> (i32, i32) {
    %c0_i32 = arith.constant 0 : i32
    %c0_i32_0 = arith.constant 0 : i32
    %c0_i32_1 = arith.constant 0 : i32
    return %c0_i32, %c0_i32_0 : i32, i32
  }
  func.func @transform_4(%arg0: i32, %arg1: i32) -> (i32, i32) {
    %c0_i32 = arith.constant 0 : i32
    %c0_i32_0 = arith.constant 0 : i32
    %c0_i32_1 = arith.constant 0 : i32
    return %c0_i32, %c0_i32_0 : i32, i32
  }
  func.func @transform_5(%arg0: i32, %arg1: i32) -> (i32, i32, i32) {
    %c0_i32 = arith.constant 0 : i32
    %c0_i32_0 = arith.constant 0 : i32
    return %arg0, %c0_i32, %arg1 : i32, i32, i32
  }
}

module attributes {stable_mosaic.version = 11 : i64} {
  func.func @_conv1x1_kernel(%arg0: i32, %arg1: i32, %arg2: memref<1x4x144xbf16, #tpu.memory_space<vmem>>, %arg3: memref<1x4x144xbf16, #tpu.memory_space<vmem>>, %arg4: memref<8x4xbf16, #tpu.memory_space<vmem>>, %arg5: memref<8x4xbf16, #tpu.memory_space<vmem>>, %arg6: memref<8x1xf32, #tpu.memory_space<vmem>>, %arg7: memref<1x8x144xf32, #tpu.memory_space<vmem>>) attributes {dimension_semantics = [#tpu.dimension_semantics<parallel>, #tpu.dimension_semantics<parallel>], iteration_bounds = array<i64: 2, 1>, scalar_prefetch = 0 : i64, scratch_operands = 0 : i64, tpu.core_type = #tpu.core_type<tc>, window_params = [{transform_indices = @transform_0, window_bounds = array<i64: 1, 4, 144>}, {transform_indices = @transform_1, window_bounds = array<i64: 1, 4, 144>}, {pipeline_mode = #tpu.pipeline_mode<synchronous>, transform_indices = @transform_2, window_bounds = array<i64: 8, 4>}, {pipeline_mode = #tpu.pipeline_mode<synchronous>, transform_indices = @transform_3, window_bounds = array<i64: 8, 4>}, {pipeline_mode = #tpu.pipeline_mode<synchronous>, transform_indices = @transform_4, window_bounds = array<i64: 8, 1>}, {transform_indices = @transform_5, window_bounds = array<i64: 1, 8, 144>}]} {
    %c0 = arith.constant 0 : index
    %c0_0 = arith.constant 0 : index
    %0 = vector.load %arg4[%c0, %c0_0] : memref<8x4xbf16, #tpu.memory_space<vmem>>, vector<8x4xbf16>
    %c0_1 = arith.constant 0 : index
    %c0_2 = arith.constant 0 : index
    %c0_3 = arith.constant 0 : index
    %1 = vector.load %arg2[%c0_1, %c0_2, %c0_3] : memref<1x4x144xbf16, #tpu.memory_space<vmem>>, vector<1x4x144xbf16>
    %2 = vector.shape_cast %1 : vector<1x4x144xbf16> to vector<4x144xbf16>
    %cst = arith.constant dense<0.000000e+00> : vector<8x144xf32>
    %3 = tpu.matmul %0, %2, %cst {dimension_numbers = #tpu.dot_dimension_numbers<[1], [0], [0], [1], [0, 0, 1, 1], [], []>} : vector<8x4xbf16>, vector<4x144xbf16>, vector<8x144xf32> -> vector<8x144xf32>
    %c0_4 = arith.constant 0 : index
    %c0_5 = arith.constant 0 : index
    %4 = vector.load %arg5[%c0_4, %c0_5] : memref<8x4xbf16, #tpu.memory_space<vmem>>, vector<8x4xbf16>
    %c0_6 = arith.constant 0 : index
    %c0_7 = arith.constant 0 : index
    %c0_8 = arith.constant 0 : index
    %5 = vector.load %arg3[%c0_6, %c0_7, %c0_8] : memref<1x4x144xbf16, #tpu.memory_space<vmem>>, vector<1x4x144xbf16>
    %6 = vector.shape_cast %5 : vector<1x4x144xbf16> to vector<4x144xbf16>
    %cst_9 = arith.constant dense<0.000000e+00> : vector<8x144xf32>
    %7 = tpu.matmul %4, %6, %cst_9 {dimension_numbers = #tpu.dot_dimension_numbers<[1], [0], [0], [1], [0, 0, 1, 1], [], []>} : vector<8x4xbf16>, vector<4x144xbf16>, vector<8x144xf32> -> vector<8x144xf32>
    %8 = arith.addf %3, %7 : vector<8x144xf32>
    %c0_10 = arith.constant 0 : index
    %c0_11 = arith.constant 0 : index
    %9 = vector.load %arg6[%c0_10, %c0_11] : memref<8x1xf32, #tpu.memory_space<vmem>>, vector<8x1xf32>
    %10 = vector.broadcast %9 : vector<8x1xf32> to vector<8x144xf32>
    %11 = arith.addf %8, %10 : vector<8x144xf32>
    %cst_12 = arith.constant 0.000000e+00 : f32
    %12 = vector.broadcast %cst_12 : f32 to vector<8x144xf32>
    %13 = arith.maximumf %11, %12 : vector<8x144xf32>
    %c0_13 = arith.constant 0 : index
    %c0_14 = arith.constant 0 : index
    %c0_15 = arith.constant 0 : index
    %14 = vector.load %arg7[%c0_13, %c0_14, %c0_15] : memref<1x8x144xf32, #tpu.memory_space<vmem>>, vector<1x8x144xf32>
    %15 = vector.shape_cast %14 : vector<1x8x144xf32> to vector<8x144xf32>
    %16 = vector.shape_cast %13 : vector<8x144xf32> to vector<1x8x144xf32>
    tpu.vector_store %arg7[%c0_13, %c0_14, %c0_15], %16 {strides = array<i32>} : memref<1x8x144xf32, #tpu.memory_space<vmem>>, vector<1x8x144xf32>,
    return
  }
  func.func @transform_0(%arg0: i32, %arg1: i32) -> (i32, i32, i32) {
    %c0_i32 = arith.constant 0 : i32
    %c0_i32_0 = arith.constant 0 : i32
    return %arg0, %c0_i32, %arg1 : i32, i32, i32
  }
  func.func @transform_1(%arg0: i32, %arg1: i32) -> (i32, i32, i32) {
    %c0_i32 = arith.constant 0 : i32
    %c0_i32_0 = arith.constant 0 : i32
    return %arg0, %c0_i32, %arg1 : i32, i32, i32
  }
  func.func @transform_2(%arg0: i32, %arg1: i32) -> (i32, i32) {
    %c0_i32 = arith.constant 0 : i32
    %c0_i32_0 = arith.constant 0 : i32
    %c0_i32_1 = arith.constant 0 : i32
    return %c0_i32, %c0_i32_0 : i32, i32
  }
  func.func @transform_3(%arg0: i32, %arg1: i32) -> (i32, i32) {
    %c0_i32 = arith.constant 0 : i32
    %c0_i32_0 = arith.constant 0 : i32
    %c0_i32_1 = arith.constant 0 : i32
    return %c0_i32, %c0_i32_0 : i32, i32
  }
  func.func @transform_4(%arg0: i32, %arg1: i32) -> (i32, i32) {
    %c0_i32 = arith.constant 0 : i32
    %c0_i32_0 = arith.constant 0 : i32
    %c0_i32_1 = arith.constant 0 : i32
    return %c0_i32, %c0_i32_0 : i32, i32
  }
  func.func @transform_5(%arg0: i32, %arg1: i32) -> (i32, i32, i32) {
    %c0_i32 = arith.constant 0 : i32
    %c0_i32_0 = arith.constant 0 : i32
    return %arg0, %c0_i32, %arg1 : i32, i32, i32
  }
}

module attributes {stable_mosaic.version = 11 : i64} {
  func.func @_conv1x1_kernel(%arg0: i32, %arg1: i32, %arg2: memref<1x4x256xbf16, #tpu.memory_space<vmem>>, %arg3: memref<1x4x256xbf16, #tpu.memory_space<vmem>>, %arg4: memref<1x4x256xbf16, #tpu.memory_space<vmem>>, %arg5: memref<8x4xbf16, #tpu.memory_space<vmem>>, %arg6: memref<1x8x256xf32, #tpu.memory_space<vmem>>) attributes {dimension_semantics = [#tpu.dimension_semantics<parallel>, #tpu.dimension_semantics<parallel>], iteration_bounds = array<i64: 2, 1>, scalar_prefetch = 0 : i64, scratch_operands = 0 : i64, tpu.core_type = #tpu.core_type<tc>, window_params = [{transform_indices = @transform_0, window_bounds = array<i64: 1, 4, 256>}, {transform_indices = @transform_1, window_bounds = array<i64: 1, 4, 256>}, {transform_indices = @transform_2, window_bounds = array<i64: 1, 4, 256>}, {pipeline_mode = #tpu.pipeline_mode<synchronous>, transform_indices = @transform_3, window_bounds = array<i64: 8, 4>}, {transform_indices = @transform_4, window_bounds = array<i64: 1, 8, 256>}]} {
    %c0 = arith.constant 0 : index
    %c0_0 = arith.constant 0 : index
    %0 = vector.load %arg5[%c0, %c0_0] : memref<8x4xbf16, #tpu.memory_space<vmem>>, vector<8x4xbf16>
    %c0_1 = arith.constant 0 : index
    %c0_2 = arith.constant 0 : index
    %c0_3 = arith.constant 0 : index
    %1 = vector.load %arg2[%c0_1, %c0_2, %c0_3] : memref<1x4x256xbf16, #tpu.memory_space<vmem>>, vector<1x4x256xbf16>
    %2 = vector.shape_cast %1 : vector<1x4x256xbf16> to vector<4x256xbf16>
    %cst = arith.constant dense<0.000000e+00> : vector<8x256xf32>
    %3 = tpu.matmul %0, %2, %cst {dimension_numbers = #tpu.dot_dimension_numbers<[1], [0], [0], [1], [0, 0, 1, 1], [], []>} : vector<8x4xbf16>, vector<4x256xbf16>, vector<8x256xf32> -> vector<8x256xf32>
    %c0_4 = arith.constant 0 : index
    %c0_5 = arith.constant 0 : index
    %4 = vector.load %arg5[%c0_4, %c0_5] : memref<8x4xbf16, #tpu.memory_space<vmem>>, vector<8x4xbf16>
    %c0_6 = arith.constant 0 : index
    %c0_7 = arith.constant 0 : index
    %c0_8 = arith.constant 0 : index
    %5 = vector.load %arg3[%c0_6, %c0_7, %c0_8] : memref<1x4x256xbf16, #tpu.memory_space<vmem>>, vector<1x4x256xbf16>
    %6 = vector.shape_cast %5 : vector<1x4x256xbf16> to vector<4x256xbf16>
    %cst_9 = arith.constant dense<0.000000e+00> : vector<8x256xf32>
    %7 = tpu.matmul %4, %6, %cst_9 {dimension_numbers = #tpu.dot_dimension_numbers<[1], [0], [0], [1], [0, 0, 1, 1], [], []>} : vector<8x4xbf16>, vector<4x256xbf16>, vector<8x256xf32> -> vector<8x256xf32>
    %8 = arith.addf %3, %7 : vector<8x256xf32>
    %c0_10 = arith.constant 0 : index
    %c0_11 = arith.constant 0 : index
    %9 = vector.load %arg5[%c0_10, %c0_11] : memref<8x4xbf16, #tpu.memory_space<vmem>>, vector<8x4xbf16>
    %c0_12 = arith.constant 0 : index
    %c0_13 = arith.constant 0 : index
    %c0_14 = arith.constant 0 : index
    %10 = vector.load %arg4[%c0_12, %c0_13, %c0_14] : memref<1x4x256xbf16, #tpu.memory_space<vmem>>, vector<1x4x256xbf16>
    %11 = vector.shape_cast %10 : vector<1x4x256xbf16> to vector<4x256xbf16>
    %cst_15 = arith.constant dense<0.000000e+00> : vector<8x256xf32>
    %12 = tpu.matmul %9, %11, %cst_15 {dimension_numbers = #tpu.dot_dimension_numbers<[1], [0], [0], [1], [0, 0, 1, 1], [], []>} : vector<8x4xbf16>, vector<4x256xbf16>, vector<8x256xf32> -> vector<8x256xf32>
    %13 = arith.addf %8, %12 : vector<8x256xf32>
    %c0_16 = arith.constant 0 : index
    %c0_17 = arith.constant 0 : index
    %c0_18 = arith.constant 0 : index
    %14 = vector.load %arg6[%c0_16, %c0_17, %c0_18] : memref<1x8x256xf32, #tpu.memory_space<vmem>>, vector<1x8x256xf32>
    %15 = vector.shape_cast %14 : vector<1x8x256xf32> to vector<8x256xf32>
    %16 = vector.shape_cast %13 : vector<8x256xf32> to vector<1x8x256xf32>
    tpu.vector_store %arg6[%c0_16, %c0_17, %c0_18], %16 {strides = array<i32>} : memref<1x8x256xf32, #tpu.memory_space<vmem>>, vector<1x8x256xf32>,
    return
  }
  func.func @transform_0(%arg0: i32, %arg1: i32) -> (i32, i32, i32) {
    %c0_i32 = arith.constant 0 : i32
    %c0_i32_0 = arith.constant 0 : i32
    return %arg0, %c0_i32, %arg1 : i32, i32, i32
  }
  func.func @transform_1(%arg0: i32, %arg1: i32) -> (i32, i32, i32) {
    %c0_i32 = arith.constant 0 : i32
    %c0_i32_0 = arith.constant 0 : i32
    return %arg0, %c0_i32, %arg1 : i32, i32, i32
  }
  func.func @transform_2(%arg0: i32, %arg1: i32) -> (i32, i32, i32) {
    %c0_i32 = arith.constant 0 : i32
    %c0_i32_0 = arith.constant 0 : i32
    return %arg0, %c0_i32, %arg1 : i32, i32, i32
  }
  func.func @transform_3(%arg0: i32, %arg1: i32) -> (i32, i32) {
    %c0_i32 = arith.constant 0 : i32
    %c0_i32_0 = arith.constant 0 : i32
    %c0_i32_1 = arith.constant 0 : i32
    return %c0_i32, %c0_i32_0 : i32, i32
  }
  func.func @transform_4(%arg0: i32, %arg1: i32) -> (i32, i32, i32) {
    %c0_i32 = arith.constant 0 : i32
    %c0_i32_0 = arith.constant 0 : i32
    return %arg0, %c0_i32, %arg1 : i32, i32, i32
  }
}

</mosaic_0001>

<bundles_post_ra>
// kernel: spectral_transform.4
= control target key start
LH: loop header
LB: loop body
LE: loop exit
PB: predicated region body
PF: predicated region fallthrough
CT: control target
= control target key end

     0   :  { %s461_s12 = smov 0   ;;  %s463_s13 = smov 0   ;;  %s500_s0 = inlined_call_operand.vmem [shape: bf16[2,4,256], index: 0, kind: input, shape index: {}]   ;;  %s501_s1 = inlined_call_operand.vmem [shape: bf16[4,4], index: 1, kind: input, shape index: {}]   ;;  %s502_s2 = inlined_call_operand.vmem [shape: f32[4,1], index: 2, kind: input, shape index: {}]   ;;  %s503_s3 = inlined_call_operand.vmem [shape: f32[2,4,256], index: 3, kind: output, shape index: {}]  }
   0x1   :  { %s465_s14 = smov 0  }
   0x2 LB: > { %s25_s15 = sadd.s32 1, %s434_s13  ;;  %p378_p0 = scmp.ge.s32.totalorder %s438_s14, 1  ;;  %s438_s14 = sphi %s465_s14, %s13_s14   ;;  %s434_s13 = sphi %s463_s13, %s505_s13   ;;  %s430_s12 = sphi %s461_s12, %s504_s12  }
   0x3   : > { %p27_p1 = scmp.ge.s32.totalorder %s25_s15, 2  ;;  %p158_p2 = scmp.lt.s32.totalorder %s438_s14, 3 }
   0x5   : > { %s507_s15 = smov (%p27_p1, %s25_s15), 0  ;;  %p159_p3 = pnand %p378_p0, %p158_p2 }
   0x6   : > { %p191_p4 = scmp.lt.s32.totalorder (!%p159_p3), %s430_s12, 1 }
   0x7   : > { %162 = sbr.rel (%p159_p3) target bundleno = 224 (0xe0), region = 32 }
   0xc   : > { %v440_v0 = vmov 0   ;;  %v213_v1 = vld [vmem:[%s502_s2] sm:$0xf]  ;;  %s509_s12 = smov (!%p191_p4, %s430_s12), 1  ;;  %vm232_vm0 = vcmask 1041408   ;;  %vm228_vm1 = vcmask 31744  }
   0xd   : > { %271 = vmatprep.mubr.bf16.mxu0 %v440_v0  ;;  %415 = vset.pattern.permute.xlu0 %v440_v0  ;;  %s388_s18 = sshll.u32 %s509_s12, 2  ;;  %v211_v5 = vld [vmem:[%s501_s1] sm:$0x3]  ;;  %s389_s24 = sshll.u32 %s509_s12, 3 }
   0xe   : > { %216 = vperm.xlu0 %415, %v213_v1   ;;  %s198_s21 = scalar_lea.vmem %s500_s0, %s388_s18  ;;  %s208_s27 = scalar_lea.vmem %s503_s3, %s389_s24 }
   0xf   : > { %v383_v2 = vld.sshfl [vmem:[%s198_s21] sm:$0x33 pattern:$0x76325410] }
  0x10   : > { %v227_v3 = vcombine.high %v383_v2, %v383_v2  ;;  %v234_v4 = vsel %vm232_vm0, %v383_v2, 0 }
  0x12   : > { %384 = vmatprep.subr.msk.bf16.mxu0 %vm232_vm0, %v227_v3 }
  0x13   : > { %254 = vmatpush1.bf16.msra.mxu0 %v234_v4 }
  0x16   : > { %385 = vmatmul.mubr.msk.bf16.vlgmr.msra.gmra.mxu0 %vm228_vm1, %v211_v5 }
  0x89   : > { %v217_v6 = vpop.permute.xlu0 %216 }
  0xd6   : > { %v273_v7 = vpop.f32.mrf.mxu0 }
  0xd7   : > { %v274_v8 = vadd.f32 %v273_v7, %v217_v6 }
  0xd8   : > { %v275_v9 = vpop.f32.mrf.mxu0 }
  0xd9   : > { %v276_v10 = vadd.f32 %v275_v9, %v217_v6  ;;  %v280_v12 = vmax.f32 %v274_v8, 0.0 }
  0xda   : > { %v277_v11 = vpop.f32.mrf.mxu0 }
  0xdb   : > { %v281_v13 = vmax.f32 %v276_v10, 0.0 }
  0xdc   : > { %v278_v14 = vpop.f32.mrf.mxu0 }
  0xdd   : > { %v284_v15 = vcombine.low %v280_v12, %v281_v13 }
  0xdf   : > { %286 = vst [vmem:[%s208_s27] sm:$0xff] %v284_v15 }
  0xe0 PF: > { %s13_s14 = sadd.s32 1, %s438_s14   ;;  %s504_s12 = smov %s434_s13 }
  0xe1   : > { %p10_p5 = scmp.ge.s32.totalorder %s13_s14, 4   ;;  %s505_s13 = smov %s507_s15 }
  0xe3   :  { %12 = sbr.rel (!%p10_p5) target bundleno = 2 (0x2), region = 62 }

// kernel: reverse.1
= control target key start
LH: loop header
LB: loop body
LE: loop exit
PB: predicated region body
PF: predicated region fallthrough
CT: control target
= control target key end

     0   :  { %v82_v8 = vld [vmem:[#allocation1 + $0x38] sm:$0xf]  ;;  %v92_v9 = vld [vmem:[#allocation1 + $0x30] sm:$0xf]  ;;  %v102_v10 = vld [vmem:[#allocation1 + $0x28] sm:$0xf]  ;;  %v159_v12 = vlaneseq  ;;  %s501_s0 = inlined_call_operand.vmem [shape: f32[2,4,8,3], index: 0, kind: input, shape index: {}]   ;;  %s502_s1 = inlined_call_operand.vmem [shape: f32[2,4,8,3], index: 1, kind: output, shape index: {}]  }
   0x1   :  { %v19_v0 = vld [vmem:[%s501_s0] sm:$0xf]  ;;  %v21_v1 = vld [vmem:[%s501_s0 + $0x4] sm:$0xf]  ;;  %v23_v2 = vld [vmem:[%s501_s0 + $0x8] sm:$0xf] }
   0x2   :  { %20 = vst [vmem:[#allocation1 + $0x4] sm:$0xf] %v19_v0  ;;  %22 = vst [vmem:[#allocation1 + $0xc] sm:$0xf] %v21_v1  ;;  %v25_v3 = vld [vmem:[%s501_s0 + $0xc] sm:$0xf] }
   0x3   :  { %24 = vst [vmem:[#allocation1 + $0x14] sm:$0xf] %v23_v2  ;;  %v27_v4 = vld [vmem:[%s501_s0 + $0x10] sm:$0xf]  ;;  %v29_v5 = vld [vmem:[%s501_s0 + $0x14] sm:$0xf] }
   0x4   :  { %26 = vst [vmem:[#allocation1 + $0x1c] sm:$0xf] %v25_v3  ;;  %28 = vst [vmem:[#allocation1 + $0x24] sm:$0xf] %v27_v4  ;;  %v31_v6 = vld [vmem:[%s501_s0 + $0x18] sm:$0xf] }
   0x5   :  { %30 = vst [vmem:[#allocation1 + $0x2c] sm:$0xf] %v29_v5  ;;  %v33_v7 = vld [vmem:[%s501_s0 + $0x1c] sm:$0xf]  ;;  %32 = vst [vmem:[#allocation1 + $0x34] sm:$0xf] %v31_v6 }
   0x6   :  { %34 = vst [vmem:[#allocation1 + $0x3c] sm:$0xf] %v33_v7  ;;  %84 = vst [vmem:[#allocation0 + $0x70] sm:$0xf] %v82_v8  ;;  %v112_v11 = vld [vmem:[#allocation1 + $0x20] sm:$0xf] }
   0x7   :  { %94 = vst [vmem:[#allocation0 + $0x60] sm:$0xf] %v92_v9  ;;  %104 = vst [vmem:[#allocation0 + $0x50] sm:$0xf] %v102_v10  ;;  %v122_v13 = vld [vmem:[#allocation1 + $0x18] sm:$0xf] }
   0x8   :  { %114 = vst [vmem:[#allocation0 + $0x40] sm:$0xf] %v112_v11  ;;  %v132_v14 = vld [vmem:[#allocation1 + $0x10] sm:$0xf]  ;;  %v142_v15 = vld [vmem:[#allocation1 + $0x8] sm:$0xf] }
   0x9   :  { %124 = vst [vmem:[#allocation0 + $0x30] sm:$0xf] %v122_v13  ;;  %134 = vst [vmem:[#allocation0 + $0x20] sm:$0xf] %v132_v14  ;;  %v149_v16 = vld [vmem:[#allocation1] sm:$0xf] }
   0xa   :  { %144 = vst [vmem:[#allocation0 + $0x10] sm:$0xf] %v142_v15  ;;  %150 = vst [vmem:[#allocation0] sm:$0xf] %v149_v16  ;;  %v470_v17 = vshrl.u32 %v159_v12, 7 }
   0xb   :  { %v127_v18 = vld [vmem:[#allocation1 + $0x14] sm:$0xf]  ;;  %v137_v19 = vld [vmem:[#allocation1 + $0xc] sm:$0xf]  ;;  %v146_v20 = vld [vmem:[#allocation1 + $0x4] sm:$0xf] }
   0xc   :  { %v97_v21 = vld [vmem:[#allocation1 + $0x2c] sm:$0xf]  ;;  %v107_v22 = vld [vmem:[#allocation1 + $0x24] sm:$0xf]  ;;  %v117_v23 = vld [vmem:[#allocation1 + $0x1c] sm:$0xf] }
   0xd   :  { %129 = vst [vmem:[#allocation0 + $0x28] sm:$0xf] %v127_v18  ;;  %139 = vst [vmem:[#allocation0 + $0x18] sm:$0xf] %v137_v19  ;;  %v77_v24 = vld [vmem:[#allocation1 + $0x3c] sm:$0xf] }
   0xe   :  { %148 = vst [vmem:[#allocation0 + $0x8] sm:$0xf] %v146_v20  ;;  %v87_v25 = vld [vmem:[#allocation1 + $0x34] sm:$0xf]  ;;  %99 = vst [vmem:[#allocation0 + $0x58] sm:$0xf] %v97_v21 }
   0xf   :  { %109 = vst [vmem:[#allocation0 + $0x48] sm:$0xf] %v107_v22  ;;  %119 = vst [vmem:[#allocation0 + $0x38] sm:$0xf] %v117_v23  ;;  %v250_v26 = vld [vmem:[#allocation0 + $0x77] ss:$-1 sm:$0xff] }
  0x10   :  { %79 = vst [vmem:[#allocation0 + $0x78] sm:$0xf] %v77_v24  ;;  %89 = vst [vmem:[#allocation0 + $0x68] sm:$0xf] %v87_v25  ;;  %v208_v27 = vld [vmem:[#allocation0 + $0x47] ss:$-1 sm:$0xff] }
  0x11   :  { %v222_v28 = vld [vmem:[#allocation0 + $0x57] ss:$-1 sm:$0xff]  ;;  %v236_v29 = vld [vmem:[#allocation0 + $0x67] ss:$-1 sm:$0xff]  ;;  %v209_v37 = vrot.slane %v208_v27, 5  ;;  %v251_v41 = vrot.slane %v250_v26, 5 }
  0x12   :  { %v166_v30 = vld [vmem:[#allocation0 + $0x17] ss:$-1 sm:$0xff]  ;;  %v180_v31 = vld [vmem:[#allocation0 + $0x27] ss:$-1 sm:$0xff]  ;;  %v223_v39 = vrot.slane %v222_v28, 5  ;;  %v237_v40 = vrot.slane %v236_v29, 5 }
  0x13   :  { %v194_v32 = vld [vmem:[#allocation0 + $0x37] ss:$-1 sm:$0xff]  ;;  %v152_v33 = vld [vmem:[#allocation0 + $0x7] ss:$-1 sm:$0xff]  ;;  %v167_v34 = vrot.slane %v166_v30, 5  ;;  %v181_v35 = vrot.slane %v180_v31, 5 }
  0x14   :  { %v195_v36 = vrot.slane %v194_v32, 5  ;;  %v153_v38 = vrot.slane %v152_v33, 5  ;;  %vm161_vm0 = vcmp.lt.s32.totalorder %v470_v17, 3  ;;  %210 = vst [vmem:[#allocation2 + $0x20] sm:$0xff] %v209_v37  ;;  %v171_v43 = vld [vmem:[#allocation0 + $0x1f] ss:$-1 sm:$0xff] }
  0x15   :  { %168 = vst [vmem:[#allocation2 + $0x8] sm:$0xff] %v167_v34  ;;  %182 = vst [vmem:[#allocation2 + $0x10] sm:$0xff] %v181_v35  ;;  %v157_v42 = vld [vmem:[#allocation0 + $0xf] ss:$-1 sm:$0xff]  ;;  %v172_v46 = vrot.slane %v171_v43, 5 }
  0x16   :  { %196 = vst [vmem:[#allocation2 + $0x18] sm:$0xff] %v195_v36  ;;  %154 = vst [vmem:[#allocation2] sm:$0xff] %v153_v38  ;;  %v185_v44 = vld [vmem:[#allocation0 + $0x2f] ss:$-1 sm:$0xff]  ;;  %v158_v45 = vrot.slane %v157_v42, 5 }
  0x17   :  { %224 = vst [vmem:[#allocation2 + $0x28] sm:$0xff] %v223_v39  ;;  %238 = vst [vmem:[#allocation2 + $0x30] sm:$0xff] %v237_v40  ;;  %v186_v47 = vrot.slane %v185_v44, 5  ;;  %v199_v48 = vld [vmem:[#allocation0 + $0x3f] ss:$-1 sm:$0xff] }
  0x18   :  { %252 = vst [vmem:[#allocation2 + $0x38] sm:$0xff] %v251_v41  ;;  %v200_v49 = vrot.slane %v199_v48, 5  ;;  %v213_v50 = vld [vmem:[#allocation0 + $0x4f] ss:$-1 sm:$0xff]  ;;  %v227_v51 = vld [vmem:[#allocation0 + $0x5f] ss:$-1 sm:$0xff] }
  0x19   :  { %162 = vst.msk [vmem:[#allocation2] sm:$0xff] %vm161_vm0, %v158_v45  ;;  %176 = vst.msk [vmem:[#allocation2 + $0x8] sm:$0xff] %vm161_vm0, %v172_v46  ;;  %v214_v52 = vrot.slane %v213_v50, 5  ;;  %v228_v53 = vrot.slane %v227_v51, 5  ;;  %v241_v54 = vld [vmem:[#allocation0 + $0x6f] ss:$-1 sm:$0xff] }
  0x1a   :  { %190 = vst.msk [vmem:[#allocation2 + $0x10] sm:$0xff] %vm161_vm0, %v186_v47  ;;  %v255_v55 = vld [vmem:[#allocation0 + $0x7f] ss:$-1 sm:$0xff]  ;;  %204 = vst.msk [vmem:[#allocation2 + $0x18] sm:$0xff] %vm161_vm0, %v200_v49  ;;  %v242_v56 = vrot.slane %v241_v54, 5 }
  0x1b   :  { %v256_v57 = vrot.slane %v255_v55, 5  ;;  %218 = vst.msk [vmem:[#allocation2 + $0x20] sm:$0xff] %vm161_vm0, %v214_v52  ;;  %232 = vst.msk [vmem:[#allocation2 + $0x28] sm:$0xff] %vm161_vm0, %v228_v53 }
  0x1c   :  { %246 = vst.msk [vmem:[#allocation2 + $0x30] sm:$0xff] %vm161_vm0, %v242_v56 }
  0x1d   :  { %260 = vst.msk [vmem:[#allocation2 + $0x38] sm:$0xff] %vm161_vm0, %v256_v57 }
  0x20   :  { %v265_v58 = vld [vmem:[#allocation2] sm:$0xf]  ;;  %v270_v59 = vld [vmem:[#allocation2 + $0x8] sm:$0xf] }
  0x21   :  { %v276_v60 = vld [vmem:[#allocation2 + $0x10] sm:$0xf]  ;;  %268 = vst [vmem:[#allocation3] sm:$0xf] %v265_v58  ;;  %274 = vst [vmem:[#allocation3 + $0x4] sm:$0xf] %v270_v59 }
  0x22   :  { %281 = vst [vmem:[#allocation3 + $0x8] sm:$0xf] %v276_v60  ;;  %v283_v61 = vld [vmem:[#allocation2 + $0x18] sm:$0xf]  ;;  %v290_v62 = vld [vmem:[#allocation2 + $0x20] sm:$0xf] }
  0x23   :  { %288 = vst [vmem:[#allocation3 + $0xc] sm:$0xf] %v283_v61  ;;  %v297_v63 = vld [vmem:[#allocation2 + $0x28] sm:$0xf]  ;;  %295 = vst [vmem:[#allocation3 + $0x10] sm:$0xf] %v290_v62 }
  0x24   :  { %302 = vst [vmem:[#allocation3 + $0x14] sm:$0xf] %v297_v63  ;;  %v304_v0 = vld [vmem:[#allocation2 + $0x30] sm:$0xf]  ;;  %v311_v1 = vld [vmem:[#allocation2 + $0x38] sm:$0xf] }
  0x25   :  { %309 = vst [vmem:[#allocation3 + $0x18] sm:$0xf] %v304_v0  ;;  %316 = vst [vmem:[#allocation3 + $0x1c] sm:$0xf] %v311_v1 }
  0x28   :  { %v333_v2 = vld [vmem:[#allocation3] sm:$0xff]  }
  0x29   :  { %334 = vst [vmem:[%s502_s1] sm:$0xff] %v333_v2  }
  0x2a   :  { %v337_v3 = vld [vmem:[#allocation3 + $0x8] sm:$0xff]  }
  0x2b   :  { %338 = vst [vmem:[%s502_s1 + $0x8] sm:$0xff] %v337_v3   ;;  %v341_v4 = vld [vmem:[#allocation3 + $0x10] sm:$0xff]  }
  0x2c   :  { %342 = vst [vmem:[%s502_s1 + $0x10] sm:$0xff] %v341_v4   ;;  %v345_v5 = vld [vmem:[#allocation3 + $0x18] sm:$0xff]  }
  0x2d   :  { %346 = vst [vmem:[%s502_s1 + $0x18] sm:$0xff] %v345_v5  }

// kernel: spectral_transform.6
= control target key start
LH: loop header
LB: loop body
LE: loop exit
PB: predicated region body
PF: predicated region fallthrough
CT: control target
= control target key end

     0   :  { %s590_s18 = smov 0   ;;  %s592_s19 = smov 0   ;;  %s639_s0 = inlined_call_operand.vmem [shape: bf16[2,4,40], index: 0, kind: input, shape index: {}]   ;;  %s640_s1 = inlined_call_operand.vmem [shape: bf16[2,4,40], index: 1, kind: input, shape index: {}]   ;;  %s641_s2 = inlined_call_operand.vmem [shape: bf16[8,4], index: 2, kind: input, shape index: {}]   ;;  %s642_s3 = inlined_call_operand.vmem [shape: bf16[8,4], index: 3, kind: input, shape index: {}]   ;;  %s643_s4 = inlined_call_operand.vmem [shape: f32[8,1], index: 4, kind: input, shape index: {}]   ;;  %s644_s5 = inlined_call_operand.vmem [shape: f32[2,8,40], index: 5, kind: output, shape index: {}]  }
   0x1   :  { %s594_s20 = smov 0  }
   0x2 LB: > { %s27_s21 = sadd.s32 1, %s551_s19  ;;  %p481_p0 = scmp.ge.s32.totalorder %s555_s20, 1  ;;  %s555_s20 = sphi %s594_s20, %s15_s20   ;;  %s551_s19 = sphi %s592_s19, %s646_s19   ;;  %s547_s18 = sphi %s590_s18, %s645_s18  }
   0x3   : > { %p29_p1 = scmp.ge.s32.totalorder %s27_s21, 2  ;;  %p219_p2 = scmp.lt.s32.totalorder %s555_s20, 3 }
   0x5   : > { %s648_s21 = smov (%p29_p1, %s27_s21), 0  ;;  %p220_p3 = pnand %p481_p0, %p219_p2 }
   0x6   : > { %p258_p4 = scmp.lt.s32.totalorder (!%p220_p3), %s547_s18, 1 }
   0x7   : > { %223 = sbr.rel (%p220_p3) target bundleno = 221 (0xdd), region = 40 }
   0xc   : > { %v557_v0 = vmov 0.0   ;;  %v378_v1 = vld [vmem:[%s643_s4] sm:$0xff]  ;;  %s650_s18 = smov (!%p258_p4, %s547_s18), 1  ;;  %vm558_vm0 = vmmov 0   ;;  %v559_v2 = vmov 0   ;;  %vm288_vm1 = vcmask 1041408  }
   0xd   : > { %493 = vmatprep.subr.bf16.mxu0 %v557_v0  ;;  %499 = vmatprep.subr.bf16.mxu1 %v557_v0  ;;  %s482_s24 = sshll.u32 %s650_s18, 1  ;;  %v282_v7 = vld [vmem:[%s642_s3] sm:$0xf]  ;;  %vm284_vm2 = vcmask 31744   ;;  %s484_s10 = sshll.u32 %s650_s18, 3  ;;  %vm386_vm3 = vcmask 326656  }
   0xe   : > { %495 = vmatprep.mubr.msk.bf16.mxu0 %vm558_vm0, %v557_v0  ;;  %501 = vmatprep.mubr.msk.bf16.mxu1 %vm558_vm0, %v557_v0  ;;  %s271_s27 = scalar_lea.vmem %s640_s1, %s482_s24  ;;  %s264_s30 = scalar_lea.vmem %s639_s0, %s482_s24  ;;  %v280_v8 = vld [vmem:[%s641_s2] sm:$0xf] }
   0xf   : > { %532 = vset.pattern.permute.xlu0 %v559_v2  ;;  %v283_v3 = vld [vmem:[%s271_s27] sm:$0x3]  ;;  %s278_s13 = scalar_lea.vmem %s644_s5, %s484_s10 }
  0x10   : > { %381 = vperm.xlu0 %532, %v378_v1   ;;  %v290_v4 = vsel %vm288_vm1, %v283_v3, 0  ;;  %v281_v5 = vld [vmem:[%s264_s30] sm:$0x3] }
  0x11   : > { %494 = vmatpush3.bf16.msra.mxu0 %v290_v4  ;;  %v336_v6 = vsel %vm288_vm1, %v281_v5, 0 }
  0x12   : > { %500 = vmatpush3.bf16.msra.mxu1 %v336_v6 }
  0x14   : > { %496 = vmatmul.mubr.msk.bf16.vlgmr.msra.gmra.mxu0 %vm284_vm2, %v282_v7 }
  0x15   : > { %502 = vmatmul.mubr.msk.bf16.vlgmr.msra.gmra.mxu1 %vm284_vm2, %v280_v8 }
  0x8b   : > { %v382_v11 = vpop.permute.xlu0 %381 }
  0xd4   : > { %v326_v9 = vpop.f32.mrf.mxu0 }
  0xd5   : > { %v372_v10 = vpop.f32.mrf.mxu1 }
  0xd6   : > { %v373_v12 = vadd.f32 %v372_v10, %v326_v9  ;;  %v497_v13 = vpop.f32.mrf.mxu0 }
  0xd7   : > { %v503_v14 = vpop.f32.mrf.mxu1 }
  0xd8   : > { %v384_v15 = vadd.f32 %v382_v11, %v373_v12  ;;  %v329_v16 = vpop.f32.mrf.mxu0 }
  0xd9   : > { %v375_v17 = vpop.f32.mrf.mxu1 }
  0xda   : > { %v385_v18 = vmax.f32 %v384_v15, 0.0  ;;  %v498_v19 = vpop.f32.mrf.mxu0 }
  0xdb   : > { %v504_v20 = vpop.f32.mrf.mxu1 }
  0xdc   : > { %387 = vst.msk [vmem:[%s278_s13] sm:$0xff] %vm386_vm3, %v385_v18 }
  0xdd PF: > { %s15_s20 = sadd.s32 1, %s555_s20   ;;  %s645_s18 = smov %s551_s19 }
  0xde   : > { %p12_p5 = scmp.ge.s32.totalorder %s15_s20, 4   ;;  %s646_s19 = smov %s648_s21 }
  0xe0   :  { %14 = sbr.rel (!%p12_p5) target bundleno = 2 (0x2), region = 73 }

// kernel: spectral_transform.5
= control target key start
LH: loop header
LB: loop body
LE: loop exit
PB: predicated region body
PF: predicated region fallthrough
CT: control target
= control target key end

     0   :  { %s646_s18 = smov 0   ;;  %s648_s19 = smov 0   ;;  %s695_s0 = inlined_call_operand.vmem [shape: bf16[2,4,144], index: 0, kind: input, shape index: {}]   ;;  %s696_s1 = inlined_call_operand.vmem [shape: bf16[2,4,144], index: 1, kind: input, shape index: {}]   ;;  %s697_s2 = inlined_call_operand.vmem [shape: bf16[8,4], index: 2, kind: input, shape index: {}]   ;;  %s698_s3 = inlined_call_operand.vmem [shape: bf16[8,4], index: 3, kind: input, shape index: {}]   ;;  %s699_s4 = inlined_call_operand.vmem [shape: f32[8,1], index: 4, kind: input, shape index: {}]   ;;  %s700_s5 = inlined_call_operand.vmem [shape: f32[2,8,144], index: 5, kind: output, shape index: {}]  }
   0x1   :  { %s650_s20 = smov 0  }
   0x2 LB: > { %s27_s21 = sadd.s32 1, %s609_s19  ;;  %p547_p0 = scmp.ge.s32.totalorder %s613_s20, 1  ;;  %s613_s20 = sphi %s650_s20, %s15_s20   ;;  %s609_s19 = sphi %s648_s19, %s702_s19   ;;  %s605_s18 = sphi %s646_s18, %s701_s18  }
   0x3   : > { %p29_p1 = scmp.ge.s32.totalorder %s27_s21, 2  ;;  %p225_p2 = scmp.lt.s32.totalorder %s613_s20, 3 }
   0x5   : > { %s704_s21 = smov (%p29_p1, %s27_s21), 0  ;;  %p226_p3 = pnand %p547_p0, %p225_p2 }
   0x6   : > { %p271_p4 = scmp.lt.s32.totalorder (!%p226_p3), %s605_s18, 1 }
   0x7   : > { %229 = sbr.rel (%p226_p3) target bundleno = 225 (0xe1), region = 40 }
   0xc   : > { %v615_v0 = vmov 0   ;;  %v425_v1 = vld [vmem:[%s699_s4] sm:$0xff]  ;;  %s706_s18 = smov (!%p271_p4, %s605_s18), 1  ;;  %vm318_vm0 = vcmask 1041408   ;;  %vm314_vm1 = vcmask 31744   ;;  %vm436_vm2 = vcmask 130048  }
   0xd   : > { %357 = vmatprep.mubr.bf16.mxu0 %v615_v0  ;;  %416 = vmatprep.mubr.bf16.mxu1 %v615_v0  ;;  %s562_s24 = sshll.u32 %s706_s18, 2  ;;  %v303_v8 = vld [vmem:[%s698_s3] sm:$0xf]  ;;  %s564_s10 = sshll.u32 %s706_s18, 4 }
   0xe   : > { %590 = vset.pattern.permute.xlu0 %v615_v0  ;;  %s288_s27 = scalar_lea.vmem %s696_s1, %s562_s24  ;;  %s278_s30 = scalar_lea.vmem %s695_s0, %s562_s24  ;;  %v301_v9 = vld [vmem:[%s697_s2] sm:$0xf] }
   0xf   : > { %428 = vperm.xlu0 %590, %v425_v1   ;;  %v554_v2 = vld.sshfl [vmem:[%s288_s27] sm:$0x33 pattern:$0x76325410]  ;;  %s298_s13 = scalar_lea.vmem %s700_s5, %s564_s10 }
  0x10   : > { %v313_v3 = vcombine.high %v554_v2, %v554_v2  ;;  %v557_v4 = vld.sshfl [vmem:[%s278_s30] sm:$0x33 pattern:$0x76325410]  ;;  %v320_v5 = vsel %vm318_vm0, %v554_v2, 0 }
  0x11   : > { %v374_v6 = vcombine.high %v557_v4, %v557_v4  ;;  %v379_v7 = vsel %vm318_vm0, %v557_v4, 0 }
  0x12   : > { %555 = vmatprep.subr.msk.bf16.mxu0 %vm318_vm0, %v313_v3 }
  0x13   : > { %558 = vmatprep.subr.msk.bf16.mxu1 %vm318_vm0, %v374_v6  ;;  %340 = vmatpush1.bf16.msra.mxu0 %v320_v5 }
  0x14   : > { %399 = vmatpush1.bf16.msra.mxu1 %v379_v7 }
  0x16   : > { %556 = vmatmul.mubr.msk.bf16.vlgmr.msra.gmra.mxu0 %vm314_vm1, %v303_v8 }
  0x17   : > { %559 = vmatmul.mubr.msk.bf16.vlgmr.msra.gmra.mxu1 %vm314_vm1, %v301_v9 }
  0x8a   : > { %v429_v12 = vpop.permute.xlu0 %428 }
  0xd6   : > { %v359_v10 = vpop.f32.mrf.mxu0 }
  0xd7   : > { %v418_v11 = vpop.f32.mrf.mxu1 }
  0xd8   : > { %v419_v13 = vadd.f32 %v418_v11, %v359_v10  ;;  %v361_v14 = vpop.f32.mrf.mxu0 }
  0xd9   : > { %v420_v15 = vpop.f32.mrf.mxu1 }
  0xda   : > { %v431_v16 = vadd.f32 %v429_v12, %v419_v13  ;;  %v421_v17 = vadd.f32 %v420_v15, %v361_v14  ;;  %v363_v18 = vpop.f32.mrf.mxu0 }
  0xdb   : > { %v422_v19 = vpop.f32.mrf.mxu1 }
  0xdc   : > { %v433_v20 = vmax.f32 %v431_v16, 0.0  ;;  %v432_v21 = vadd.f32 %v429_v12, %v421_v17  ;;  %v364_v22 = vpop.f32.mrf.mxu0 }
  0xdd   : > { %v423_v23 = vpop.f32.mrf.mxu1 }
  0xde   : > { %435 = vst [vmem:[%s298_s13] sm:$0xff] %v433_v20  ;;  %v434_v24 = vmax.f32 %v432_v21, 0.0 }
  0xe0   : > { %437 = vst.msk [vmem:[%s298_s13 + $0x8] sm:$0xff] %vm436_vm2, %v434_v24 }
  0xe1 PF: > { %s15_s20 = sadd.s32 1, %s613_s20   ;;  %s701_s18 = smov %s609_s19 }
  0xe2   : > { %p12_p5 = scmp.ge.s32.totalorder %s15_s20, 4   ;;  %s702_s19 = smov %s704_s21 }
  0xe4   :  { %14 = sbr.rel (!%p12_p5) target bundleno = 2 (0x2), region = 73 }

// kernel: reverse.0
= control target key start
LH: loop header
LB: loop body
LE: loop exit
PB: predicated region body
PF: predicated region fallthrough
CT: control target
= control target key end

     0   :  { %v72_v3 = vlaneseq  ;;  %v65_v9 = vld [vmem:[#allocation0 + $0x7] ss:$-1 sm:$0xff]  ;;  %v79_v12 = vld [vmem:[#allocation0 + $0x17] ss:$-1 sm:$0xff]  ;;  %s331_s0 = inlined_call_operand.vmem [shape: f32[2,4,16,7], index: 0, kind: input, shape index: {}]   ;;  %s332_s1 = inlined_call_operand.vmem [shape: f32[2,4,16,7], index: 1, kind: output, shape index: {}]  }
   0x1   :  { %v45_v0 = vld [vmem:[%s331_s0] sm:$0xff]  ;;  %v47_v1 = vld [vmem:[%s331_s0 + $0x8] sm:$0xff]  ;;  %v49_v2 = vld [vmem:[%s331_s0 + $0x10] sm:$0xff]  ;;  %v66_v10 = vrot.slane %v65_v9, 1  ;;  %v80_v14 = vrot.slane %v79_v12, 1 }
   0x2   :  { %46 = vst [vmem:[#allocation0 + $0x8] sm:$0xff] %v45_v0  ;;  %48 = vst [vmem:[#allocation0 + $0x18] sm:$0xff] %v47_v1  ;;  %v51_v4 = vld [vmem:[%s331_s0 + $0x18] sm:$0xff]  ;;  %v53_v5 = vld [vmem:[%s331_s0 + $0x20] sm:$0xff]  ;;  %v73_v11 = vshrl.u32 %v72_v3, 7 }
   0x3   :  { %50 = vst [vmem:[#allocation0 + $0x28] sm:$0xff] %v49_v2  ;;  %v55_v6 = vld [vmem:[%s331_s0 + $0x28] sm:$0xff]  ;;  %52 = vst [vmem:[#allocation0 + $0x38] sm:$0xff] %v51_v4  ;;  %v57_v7 = vld [vmem:[%s331_s0 + $0x30] sm:$0xff] }
   0x4   :  { %54 = vst [vmem:[#allocation0 + $0x48] sm:$0xff] %v53_v5  ;;  %56 = vst [vmem:[#allocation0 + $0x58] sm:$0xff] %v55_v6  ;;  %v59_v8 = vld [vmem:[%s331_s0 + $0x38] sm:$0xff]  ;;  %v93_v13 = vld [vmem:[#allocation0 + $0x27] ss:$-1 sm:$0xff]  ;;  %vm74_vm0 = vcmp.lt.s32.totalorder %v73_v11, 7 }
   0x5   :  { %58 = vst [vmem:[#allocation0 + $0x68] sm:$0xff] %v57_v7  ;;  %60 = vst [vmem:[#allocation0 + $0x78] sm:$0xff] %v59_v8  ;;  %v94_v15 = vrot.slane %v93_v13, 1  ;;  %v107_v16 = vld [vmem:[#allocation0 + $0x37] ss:$-1 sm:$0xff] }
   0x6   :  { %67 = vst [vmem:[#allocation1] sm:$0xff] %v66_v10  ;;  %v108_v17 = vrot.slane %v107_v16, 1  ;;  %v121_v18 = vld [vmem:[#allocation0 + $0x47] ss:$-1 sm:$0xff]  ;;  %v135_v19 = vld [vmem:[#allocation0 + $0x57] ss:$-1 sm:$0xff] }
   0x7   :  { %81 = vst [vmem:[#allocation1 + $0x8] sm:$0xff] %v80_v14  ;;  %95 = vst [vmem:[#allocation1 + $0x10] sm:$0xff] %v94_v15  ;;  %v122_v20 = vrot.slane %v121_v18, 1  ;;  %v136_v21 = vrot.slane %v135_v19, 1  ;;  %v149_v22 = vld [vmem:[#allocation0 + $0x67] ss:$-1 sm:$0xff] }
   0x8   :  { %v163_v23 = vld [vmem:[#allocation0 + $0x77] ss:$-1 sm:$0xff]  ;;  %109 = vst [vmem:[#allocation1 + $0x18] sm:$0xff] %v108_v17  ;;  %v150_v24 = vrot.slane %v149_v22, 1 }
   0x9   :  { %v164_v25 = vrot.slane %v163_v23, 1  ;;  %v70_v26 = vld [vmem:[#allocation0 + $0xf] ss:$-1 sm:$0xff]  ;;  %v84_v27 = vld [vmem:[#allocation0 + $0x1f] ss:$-1 sm:$0xff]  ;;  %123 = vst [vmem:[#allocation1 + $0x20] sm:$0xff] %v122_v20 }
   0xa   :  { %v98_v28 = vld [vmem:[#allocation0 + $0x2f] ss:$-1 sm:$0xff]  ;;  %137 = vst [vmem:[#allocation1 + $0x28] sm:$0xff] %v136_v21  ;;  %v71_v29 = vrot.slane %v70_v26, 1  ;;  %v85_v30 = vrot.slane %v84_v27, 1  ;;  %151 = vst [vmem:[#allocation1 + $0x30] sm:$0xff] %v150_v24 }
   0xb   :  { %v99_v31 = vrot.slane %v98_v28, 1  ;;  %v112_v32 = vld [vmem:[#allocation0 + $0x3f] ss:$-1 sm:$0xff]  ;;  %165 = vst [vmem:[#allocation1 + $0x38] sm:$0xff] %v164_v25  ;;  %v126_v34 = vld [vmem:[#allocation0 + $0x4f] ss:$-1 sm:$0xff] }
   0xc   :  { %v113_v33 = vrot.slane %v112_v32, 1  ;;  %v140_v35 = vld [vmem:[#allocation0 + $0x5f] ss:$-1 sm:$0xff]  ;;  %75 = vst.msk [vmem:[#allocation1] sm:$0xff] %vm74_vm0, %v71_v29  ;;  %89 = vst.msk [vmem:[#allocation1 + $0x8] sm:$0xff] %vm74_vm0, %v85_v30  ;;  %v127_v36 = vrot.slane %v126_v34, 1 }
   0xd   :  { %103 = vst.msk [vmem:[#allocation1 + $0x10] sm:$0xff] %vm74_vm0, %v99_v31  ;;  %v141_v37 = vrot.slane %v140_v35, 1  ;;  %v154_v38 = vld [vmem:[#allocation0 + $0x6f] ss:$-1 sm:$0xff]  ;;  %v168_v39 = vld [vmem:[#allocation0 + $0x7f] ss:$-1 sm:$0xff] }
   0xe   :  { %117 = vst.msk [vmem:[#allocation1 + $0x18] sm:$0xff] %vm74_vm0, %v113_v33  ;;  %v155_v40 = vrot.slane %v154_v38, 1  ;;  %v169_v41 = vrot.slane %v168_v39, 1  ;;  %131 = vst.msk [vmem:[#allocation1 + $0x20] sm:$0xff] %vm74_vm0, %v127_v36 }
   0xf   :  { %145 = vst.msk [vmem:[#allocation1 + $0x28] sm:$0xff] %vm74_vm0, %v141_v37 }
  0x10   :  { %159 = vst.msk [vmem:[#allocation1 + $0x30] sm:$0xff] %vm74_vm0, %v155_v40  ;;  %173 = vst.msk [vmem:[#allocation1 + $0x38] sm:$0xff] %vm74_vm0, %v169_v41 }
  0x13   :  { %v216_v42 = vld [vmem:[#allocation1] sm:$0xff]  ;;  %v218_v43 = vld [vmem:[#allocation1 + $0x8] sm:$0xff] }
  0x14   :  { %v220_v44 = vld [vmem:[#allocation1 + $0x10] sm:$0xff]  ;;  %217 = vst [vmem:[%s332_s1] sm:$0xff] %v216_v42  ;;  %219 = vst [vmem:[%s332_s1 + $0x8] sm:$0xff] %v218_v43 }
  0x15   :  { %221 = vst [vmem:[%s332_s1 + $0x10] sm:$0xff] %v220_v44  ;;  %v222_v45 = vld [vmem:[#allocation1 + $0x18] sm:$0xff]  ;;  %v224_v46 = vld [vmem:[#allocation1 + $0x20] sm:$0xff] }
  0x16   :  { %223 = vst [vmem:[%s332_s1 + $0x18] sm:$0xff] %v222_v45  ;;  %v226_v47 = vld [vmem:[#allocation1 + $0x28] sm:$0xff]  ;;  %225 = vst [vmem:[%s332_s1 + $0x20] sm:$0xff] %v224_v46 }
  0x17   :  { %227 = vst [vmem:[%s332_s1 + $0x28] sm:$0xff] %v226_v47  ;;  %v228_v48 = vld [vmem:[#allocation1 + $0x30] sm:$0xff]  ;;  %v230_v49 = vld [vmem:[#allocation1 + $0x38] sm:$0xff] }
  0x18   :  { %229 = vst [vmem:[%s332_s1 + $0x30] sm:$0xff] %v228_v48  ;;  %231 = vst [vmem:[%s332_s1 + $0x38] sm:$0xff] %v230_v49 }

// kernel: spectral_transform.7
= control target key start
LH: loop header
LB: loop body
LE: loop exit
PB: predicated region body
PF: predicated region fallthrough
CT: control target
= control target key end

     0   :  { %s717_s15 = smov 0   ;;  %s719_s16 = smov 0   ;;  %s769_s0 = inlined_call_operand.vmem [shape: bf16[2,4,256], index: 0, kind: input, shape index: {}]   ;;  %s770_s1 = inlined_call_operand.vmem [shape: bf16[2,4,256], index: 1, kind: input, shape index: {}]   ;;  %s771_s2 = inlined_call_operand.vmem [shape: bf16[2,4,256], index: 2, kind: input, shape index: {}]   ;;  %s772_s3 = inlined_call_operand.vmem [shape: bf16[8,4], index: 3, kind: input, shape index: {}]   ;;  %s773_s4 = inlined_call_operand.vmem [shape: f32[2,8,256], index: 4, kind: output, shape index: {}]  }
   0x1   :  { %s721_s17 = smov 0  }
   0x2 LB: > { %s26_s18 = sadd.s32 1, %s685_s16  ;;  %p618_p0 = scmp.ge.s32.totalorder %s689_s17, 1  ;;  %s689_s17 = sphi %s721_s17, %s14_s17   ;;  %s685_s16 = sphi %s719_s16, %s775_s16   ;;  %s681_s15 = sphi %s717_s15, %s774_s15  }
   0x3   : > { %p28_p1 = scmp.ge.s32.totalorder %s26_s18, 2  ;;  %p217_p2 = scmp.lt.s32.totalorder %s689_s17, 3 }
   0x5   : > { %s777_s18 = smov (%p28_p1, %s26_s18), 0  ;;  %p218_p3 = pnand %p618_p0, %p217_p2 }
   0x6   : > { %p270_p4 = scmp.lt.s32.totalorder (!%p218_p3), %s681_s15, 1 }
   0x7   : > { %221 = sbr.rel (%p218_p3) target bundleno = 229 (0xe5), region = 36 }
   0xc   : > { %v691_v0 = vmov 0   ;;  %s779_s15 = smov (!%p270_p4, %s681_s15), 1  ;;  %vm326_vm0 = vcmask 1041408   ;;  %v310_v9 = vld [vmem:[%s772_s3] sm:$0xf]  ;;  %vm322_vm1 = vcmask 31744  }
   0xd   : > { %365 = vmatprep.mubr.bf16.mxu0 %v691_v0  ;;  %421 = vmatprep.mubr.bf16.mxu1 %v691_v0  ;;  %s638_s19 = sshll.u32 %s779_s15, 2  ;;  %s641_s5 = sshll.u32 %s779_s15, 4 }
   0xe   : > { %s287_s22 = scalar_lea.vmem %s770_s1, %s638_s19  ;;  %s297_s25 = scalar_lea.vmem %s771_s2, %s638_s19 }
   0xf   : > { %v627_v1 = vld.sshfl [vmem:[%s287_s22] sm:$0x33 pattern:$0x76325410]  ;;  %s277_s28 = scalar_lea.vmem %s769_s0, %s638_s19  ;;  %s307_s8 = scalar_lea.vmem %s773_s4, %s641_s5 }
  0x10   : > { %v321_v2 = vcombine.high %v627_v1, %v627_v1  ;;  %v633_v3 = vld.sshfl [vmem:[%s297_s25] sm:$0x33 pattern:$0x76325410]  ;;  %v328_v4 = vsel %vm326_vm0, %v627_v1, 0 }
  0x11   : > { %v630_v5 = vld.sshfl [vmem:[%s277_s28] sm:$0x33 pattern:$0x76325410]  ;;  %v439_v6 = vcombine.high %v633_v3, %v633_v3  ;;  %v441_v10 = vsel %vm326_vm0, %v633_v3, 0 }
  0x12   : > { %628 = vmatprep.subr.msk.bf16.mxu0 %vm326_vm0, %v321_v2  ;;  %v382_v7 = vcombine.high %v630_v5, %v630_v5  ;;  %v384_v8 = vsel %vm326_vm0, %v630_v5, 0 }
  0x13   : > { %348 = vmatpush1.bf16.msra.mxu0 %v328_v4 }
  0x14   : > { %631 = vmatprep.subr.msk.bf16.mxu1 %vm326_vm0, %v382_v7  ;;  %634 = vmatprep.subr.msk.bf16.mxu0 %vm326_vm0, %v439_v6 }
  0x15   : > { %404 = vmatpush1.bf16.msra.mxu1 %v384_v8 }
  0x16   : > { %629 = vmatmul.mubr.msk.bf16.vlgmr.msra.gmra.mxu0 %vm322_vm1, %v310_v9 }
  0x17   : > { %461 = vmatpush1.bf16.msra.mxu0 %v441_v10  ;;  %478 = vmatprep.mubr.bf16.mxu0 %v691_v0 }
  0x18   : > { %632 = vmatmul.mubr.msk.bf16.vlgmr.msra.gmra.mxu1 %vm322_vm1, %v310_v9 }
  0x1e   : > { %635 = vmatmul.mubr.msk.bf16.vlgmr.msra.gmra.mxu0 %vm322_vm1, %v310_v9 }
  0xd6   : > { %v367_v11 = vpop.f32.mrf.mxu0 }
  0xd8   : > { %v423_v12 = vpop.f32.mrf.mxu1  ;;  %v369_v13 = vpop.f32.mrf.mxu0 }
  0xd9   : > { %v424_v18 = vadd.f32 %v423_v12, %v367_v11 }
  0xda   : > { %v425_v14 = vpop.f32.mrf.mxu1  ;;  %v371_v15 = vpop.f32.mrf.mxu0 }
  0xdb   : > { %v426_v21 = vadd.f32 %v425_v14, %v369_v13 }
  0xdc   : > { %v372_v16 = vpop.f32.mrf.mxu0  ;;  %v427_v17 = vpop.f32.mrf.mxu1 }
  0xde   : > { %v428_v19 = vpop.f32.mrf.mxu1  ;;  %v480_v20 = vpop.f32.mrf.mxu0 }
  0xdf   : > { %v487_v22 = vadd.f32 %v480_v20, %v424_v18 }
  0xe0   : > { %v482_v23 = vpop.f32.mrf.mxu0 }
  0xe1   : > { %489 = vst [vmem:[%s307_s8] sm:$0xff] %v487_v22  ;;  %v488_v24 = vadd.f32 %v482_v23, %v426_v21 }
  0xe2   : > { %v484_v25 = vpop.f32.mrf.mxu0 }
  0xe3   : > { %490 = vst [vmem:[%s307_s8 + $0x8] sm:$0xff] %v488_v24 }
  0xe4   : > { %v485_v26 = vpop.f32.mrf.mxu0 }
  0xe5 PF: > { %s14_s17 = sadd.s32 1, %s689_s17   ;;  %s774_s15 = smov %s685_s16 }
  0xe6   : > { %p11_p5 = scmp.ge.s32.totalorder %s14_s17, 4   ;;  %s775_s16 = smov %s777_s18 }
  0xe8   :  { %13 = sbr.rel (!%p11_p5) target bundleno = 2 (0x2), region = 72 }

</bundles_post_ra>
